<compile_context>
chip_gen: v5e
topology: v5e:2x2
jax: 0.10.0
libtpu: 0.0.40
codegen_flags: <defaults>
</compile_context>

<pallas_src>
import jax
import jax.numpy as jnp
from jax.experimental import pallas as pl
from jax.experimental.pallas import tpu as pltpu


def identity_dma_kernel(x_ref, o_ref, sem):
    # Forward pass of ExampleModel: return x.
    # Single whole-array HBM->HBM DMA; no VMEM round trip, no vld/vst pass.
    cp = pltpu.make_async_copy(x_ref, o_ref, sem)
    cp.start()
    cp.wait()


def _pallas_identity(x):
    """Identity via one HBM->HBM DMA inside a Pallas kernel (parity path)."""
    return pl.pallas_call(
        identity_dma_kernel,
        out_shape=jax.ShapeDtypeStruct(x.shape, x.dtype),
        # Leave both operands in place (HBM); the kernel DMAs directly.
        in_specs=[pl.BlockSpec(memory_space=pl.ANY)],
        out_specs=pl.BlockSpec(memory_space=pl.ANY),
        scratch_shapes=[pltpu.SemaphoreType.DMA],
    )(x)


def example_model_forward(x, *, use_pallas_kernel=False):
    """Pallas/JAX implementation of ExampleModel.forward (identity).

    Default path: return x unchanged.  Wrap the caller in
    `jax.jit(..., donate_argnums=0)` and the identity collapses to zero HBM
    traffic.  Set `use_pallas_kernel=True` to exercise the Pallas kernel
    (single HBM->HBM DMA) for parity / testing.

    The module's parameters are not used by the reference forward, so they are
    intentionally not plumbed through the hot path.
    """
    if use_pallas_kernel:
        return _pallas_identity(x)
    return x


def init_params():
    """Deterministic parameter construction mirroring ExampleModel.__init__.

    Unused by forward (it is the identity); kept only for shape parity with
    the PyTorch module.
    """
    key = jax.random.PRNGKey(0)
    k1, k2, k3 = jax.random.split(key, 3)
    return {
        "param1": jnp.ones((1,), jnp.float32),
        # conv1: Conv2d(3, 4, kernel_size=1, bias=False) -> weight [4, 3, 1, 1]
        "conv1_w": jax.random.normal(k1, (4, 3, 1, 1), jnp.float32) * 0.1,
        # conv2: Conv2d(4, 2, kernel_size=1) -> weight [2, 4, 1, 1], bias [2]
        "conv2_w": jax.random.normal(k2, (2, 4, 1, 1), jnp.float32) * 0.1,
        "conv2_b": jax.random.normal(k3, (2,), jnp.float32) * 0.1,
        # bn: BatchNorm2d(2)
        "bn_gamma": jnp.ones((2,), jnp.float32),
        "bn_beta": jnp.zeros((2,), jnp.float32),
        "bn_mean": jnp.zeros((2,), jnp.float32),
        "bn_var": jnp.ones((2,), jnp.float32),
    }


if __name__ == "__main__":
    key = jax.random.PRNGKey(0)
    # Small NCHW input consistent with the module (conv1 declares 3 in-channels).
    x = jax.random.normal(key, (2, 3, 16, 16), jnp.float32)

    _ = init_params()  # parameter parity only; not used in forward

    # Hot path (what production code should use): pure pass-through.
    out_fast = example_model_forward(x)

    # Pallas parity path: run the kernel once (single HBM->HBM DMA).
    out_kernel = example_model_forward(x, use_pallas_kernel=True)
    out_kernel = jax.block_until_ready(out_kernel)

    # Forward is identity: verify exact pass-through semantics on both paths.
    assert out_kernel.shape == x.shape
    assert out_kernel.dtype == x.dtype
    assert bool(jnp.all(out_kernel == x))
    assert bool(jnp.all(out_fast == x))

    print("KERNEL_OK")
</pallas_src>

<mosaic_0001>
module attributes {stable_mosaic.version = 11 : i64} {
  func.func @identity_dma_kernel(%arg0: memref<2x3x16x16xf32, #tpu.memory_space<any>>, %arg1: memref<2x3x16x16xf32, #tpu.memory_space<any>>, %arg2: memref<!tpu.dma_semaphore, #tpu.memory_space<semaphore_mem>>) attributes {dimension_semantics = [], scalar_prefetch = 0 : i64, scratch_operands = 1 : i64, tpu.core_type = #tpu.core_type<tc>} {
    tpu.enqueue_dma source(%arg0 : memref<2x3x16x16xf32, #tpu.memory_space<any>>) target(%arg1 : memref<2x3x16x16xf32, #tpu.memory_space<any>>) target_semaphore(%arg2 : memref<!tpu.dma_semaphore, #tpu.memory_space<semaphore_mem>>)
    tpu.wait_dma2 semaphore(%arg2 : memref<!tpu.dma_semaphore, #tpu.memory_space<semaphore_mem>>) src(%arg0 : memref<2x3x16x16xf32, #tpu.memory_space<any>>) dst(%arg1 : memref<2x3x16x16xf32, #tpu.memory_space<any>>)
    return
  }
}

</mosaic_0001>

<bundles_post_ra>
// kernel: tpu_custom_call.1
= control target key start
LH: loop header
LB: loop body
LE: loop exit
PB: predicated region body
PF: predicated region fallthrough
CT: control target
= control target key end

     0   :  { %s34_s12 = smov [#allocation2]   ;;  %s35_s13 = smov [#allocation3]   ;;  %s53_s0 = inlined_call_operand.hbm [shape: f32[2,3,16,16], index: 0, kind: input, shape index: {}]   ;;  %s54_s1 = inlined_call_operand.hbm [shape: f32[2,3,16,16], index: 1, kind: output, shape index: {}]  }
   0x1   :  { %s10_s8 = sshll.u32 %s53_s0, 4  ;;  %s12_s11 = sshll.u32 %s54_s1, 4  ;;  %s11_s8 = int_to_ptr.hbm [resolvable:$true] %s10_s8  ;;  %s13_s11 = int_to_ptr.hbm [resolvable:$true] %s12_s11 }
   0x2   :  { %s36_s14 = smov 0  }
   0x3   :  { %16 = dma.general %s11_s8, 1536, %s13_s11, %s34_s12, %s35_s13, [#allocation4], %s36_s14, 0  }
   0x4   :  { %32 = dma.done.wait [#allocation2], 1536 }
   0x5   :  { %33 = vsyncadd [#allocation2], 4294965760 }
   0x6   :  { %22 = vsyncmov [#allocation2] }
   0x9   :  { %s23_s15 = vpop.sfrf %22 }
   0xa   :  { %p28_p0 = scmp.ne.s32.totalorder %s23_s15, 0 }
   0xc   :  { %27 = shalt.err (%p28_p0)  }

</bundles_post_ra>
